<compile_context>
chip_gen: v6e
topology: v6e:2x2x1
jax: 0.10.0
libtpu: 0.0.40
codegen_flags: <defaults>
</compile_context>

<pallas_src>
import jax
import jax.numpy as jnp
from jax.experimental import pallas as pl
from jax.experimental.pallas import tpu as pltpu


def rnn_kernel(x_ref, p_ref, o_ref):
    """x_ref: (T*B, 1)  time-major flattened input (input_size == 1, squeezed)
    p_ref: (H+4, H) packed params:
             rows [0:H]   = W_hh^T
             row  [H]     = W_ih row   (torch weight_ih_l0 has shape (H, 1))
             row  [H+1]   = b_ih + b_hh
             row  [H+2]   = fc weight row
             row  [H+3,0] = fc bias
    o_ref: (B, 1)
    """
    TB = x_ref.shape[0]
    H = p_ref.shape[1]
    B = o_ref.shape[0]
    T = TB // B

    # Static slices of the packed param slab (all resident in vregs for the whole kernel).
    wih = p_ref[H:H + 1, :]                      # (1, H)
    bias = p_ref[H + 1:H + 2, :]                 # (1, H)
    fcw = p_ref[H + 2:H + 3, :]                  # (1, H)
    fcb = p_ref[H + 3:H + 4, :][:, :1]           # (1, 1)
    whh_bf = p_ref[0:H, :].astype(jnp.bfloat16)  # (H, H), bf16 MXU operand, held across steps

    # Hoisted input projection + bias: (T*B,1)*(1,H)+(1,H) -> (T*B, H) 2-D lane-dense slab.
    pre_x = x_ref[...] * wih + bias

    # Step 0: h0 == 0, so h1 = tanh(pre_x[0]) — no matmul needed.
    h = jnp.tanh(pre_x[0:B, :])

    # Steps 1..T-1: per-step critical path = bf16 MXU matmul (f32 acc) + VPU add + EUP tanh.
    # Static Python unroll (T small & static) with static sublane slices of pre_x.
    for t in range(1, T):
        hh = jnp.dot(h.astype(jnp.bfloat16), whh_bf,
                     preferred_element_type=jnp.float32)       # (B, H) f32
        h = jnp.tanh(pre_x[t * B:(t + 1) * B, :] + hh)

    # fc + sigmoid: VPU multiply + XLU lane-reduce (avoids restarting the MXU at the tail).
    logits = jnp.sum(h * fcw, axis=-1, keepdims=True) + fcb    # (B, 1)
    o_ref[...] = jax.nn.sigmoid(logits)


def pack_params(params):
    """Pack all RNN/FC weights & biases into one (H+4, H) f32 slab -> single DMA."""
    H = params["w_hh"].shape[0]
    slab = jnp.zeros((H + 4, H), jnp.float32)
    slab = slab.at[:H, :].set(params["w_hh"].T)                       # W_hh^T
    slab = slab.at[H, :].set(params["w_ih"].reshape(H))               # W_ih row
    slab = slab.at[H + 1, :].set(params["b_ih"] + params["b_hh"])     # combined bias
    slab = slab.at[H + 2, :].set(params["fc_w"].reshape(H))           # fc weight row
    slab = slab.at[H + 3, 0].set(params["fc_b"].reshape(()))          # fc bias scalar
    return slab


def simple_rnn_forward(x, params):
    """x: (B, T, 1) float32.  Returns (B, 1) float32."""
    B, T, _ = x.shape

    # Time-major, feature dim squeezed, flattened to a (T*B, 1) column for the hoisted projection.
    x_flat = jnp.transpose(x[..., 0]).reshape(T * B, 1)
    p_slab = pack_params(params)

    vmem = pl.BlockSpec(memory_space=pltpu.MemorySpace.VMEM)
    return pl.pallas_call(
        rnn_kernel,
        out_shape=jax.ShapeDtypeStruct((B, 1), jnp.float32),
        in_specs=[vmem, vmem],
        out_specs=vmem,
    )(x_flat, p_slab)


def init_params(key, hidden_size=16):
    """Deterministic init mimicking PyTorch's U(-1/sqrt(H), 1/sqrt(H))."""
    H = hidden_size
    bound = 1.0 / jnp.sqrt(jnp.float32(H))
    ks = jax.random.split(key, 6)
    u = lambda k, shape: jax.random.uniform(k, shape, jnp.float32, -bound, bound)
    return {
        "w_ih": u(ks[0], (H, 1)),    # nn.RNN weight_ih_l0
        "w_hh": u(ks[1], (H, H)),    # nn.RNN weight_hh_l0
        "b_ih": u(ks[2], (H,)),      # nn.RNN bias_ih_l0
        "b_hh": u(ks[3], (H,)),      # nn.RNN bias_hh_l0
        "fc_w": u(ks[4], (1, H)),    # nn.Linear weight
        "fc_b": u(ks[5], (1,)),      # nn.Linear bias
    }


def reference_forward(x, params):
    """Pure-JAX f32 reference matching PyTorch nn.RNN(tanh) + Linear + sigmoid."""
    B, T, _ = x.shape
    H = params["w_hh"].shape[0]
    h = jnp.zeros((B, H), jnp.float32)
    for t in range(T):
        x_t = x[:, t, :]  # (B, 1)
        h = jnp.tanh(x_t @ params["w_ih"].T + params["b_ih"]
                     + h @ params["w_hh"].T + params["b_hh"])
    logits = h @ params["fc_w"].T + params["fc_b"]
    return jax.nn.sigmoid(logits)


if __name__ == "__main__":
    B, T, H = 2, 8, 16
    key = jax.random.PRNGKey(0)
    k_x, k_p = jax.random.split(key)

    x = jax.random.normal(k_x, (B, T, 1), dtype=jnp.float32)
    params = init_params(k_p, hidden_size=H)

    out = jax.block_until_ready(simple_rnn_forward(x, params))
    ref = reference_forward(x, params)

    assert out.shape == (B, 1), out.shape
    # bf16 MXU operands in the recurrence -> compare against the f32 reference at a looser tol.
    assert jnp.allclose(out, ref, atol=1e-2, rtol=1e-2), (out, ref)
    print("KERNEL_OK")
</pallas_src>

<mosaic_0001>
module attributes {stable_mosaic.version = 11 : i64} {
  func.func @rnn_kernel(%arg0: memref<16x1xf32, #tpu.memory_space<vmem>>, %arg1: memref<20x16xf32, #tpu.memory_space<vmem>>, %arg2: memref<2x1xf32, #tpu.memory_space<vmem>>) attributes {dimension_semantics = [], scalar_prefetch = 0 : i64, scratch_operands = 0 : i64, tpu.core_type = #tpu.core_type<tc>} {
    %c16 = arith.constant 16 : index
    %c0 = arith.constant 0 : index
    %0 = vector.load %arg1[%c16, %c0] : memref<20x16xf32, #tpu.memory_space<vmem>>, vector<1x16xf32>
    %c17 = arith.constant 17 : index
    %c0_0 = arith.constant 0 : index
    %1 = vector.load %arg1[%c17, %c0_0] : memref<20x16xf32, #tpu.memory_space<vmem>>, vector<1x16xf32>
    %c18 = arith.constant 18 : index
    %c0_1 = arith.constant 0 : index
    %2 = vector.load %arg1[%c18, %c0_1] : memref<20x16xf32, #tpu.memory_space<vmem>>, vector<1x16xf32>
    %c19 = arith.constant 19 : index
    %c0_2 = arith.constant 0 : index
    %3 = vector.load %arg1[%c19, %c0_2] : memref<20x16xf32, #tpu.memory_space<vmem>>, vector<1x16xf32>
    %4 = vector.extract_strided_slice %3 {offsets = [0, 0], sizes = [1, 1], strides = [1, 1]} : vector<1x16xf32> to vector<1x1xf32>
    %c0_3 = arith.constant 0 : index
    %c0_4 = arith.constant 0 : index
    %5 = vector.load %arg1[%c0_3, %c0_4] : memref<20x16xf32, #tpu.memory_space<vmem>>, vector<16x16xf32>
    %6 = arith.truncf %5 : vector<16x16xf32> to vector<16x16xbf16>
    %c0_5 = arith.constant 0 : index
    %c0_6 = arith.constant 0 : index
    %7 = vector.load %arg0[%c0_5, %c0_6] : memref<16x1xf32, #tpu.memory_space<vmem>>, vector<16x1xf32>
    %8 = vector.broadcast %7 : vector<16x1xf32> to vector<16x16xf32>
    %9 = vector.broadcast %0 : vector<1x16xf32> to vector<16x16xf32>
    %10 = arith.mulf %8, %9 : vector<16x16xf32>
    %11 = vector.broadcast %1 : vector<1x16xf32> to vector<16x16xf32>
    %12 = arith.addf %10, %11 : vector<16x16xf32>
    %13 = vector.extract_strided_slice %12 {offsets = [0, 0], sizes = [2, 16], strides = [1, 1]} : vector<16x16xf32> to vector<2x16xf32>
    %14 = math.tanh %13 : vector<2x16xf32>
    %15 = arith.truncf %14 : vector<2x16xf32> to vector<2x16xbf16>
    %cst = arith.constant dense<0.000000e+00> : vector<2x16xf32>
    %16 = tpu.matmul %15, %6, %cst {dimension_numbers = #tpu.dot_dimension_numbers<[1], [0], [0], [1], [0, 0, 1, 1], [], []>} : vector<2x16xbf16>, vector<16x16xbf16>, vector<2x16xf32> -> vector<2x16xf32>
    %17 = vector.extract_strided_slice %12 {offsets = [2, 0], sizes = [2, 16], strides = [1, 1]} : vector<16x16xf32> to vector<2x16xf32>
    %18 = arith.addf %17, %16 : vector<2x16xf32>
    %19 = math.tanh %18 : vector<2x16xf32>
    %20 = arith.truncf %19 : vector<2x16xf32> to vector<2x16xbf16>
    %cst_7 = arith.constant dense<0.000000e+00> : vector<2x16xf32>
    %21 = tpu.matmul %20, %6, %cst_7 {dimension_numbers = #tpu.dot_dimension_numbers<[1], [0], [0], [1], [0, 0, 1, 1], [], []>} : vector<2x16xbf16>, vector<16x16xbf16>, vector<2x16xf32> -> vector<2x16xf32>
    %22 = vector.extract_strided_slice %12 {offsets = [4, 0], sizes = [2, 16], strides = [1, 1]} : vector<16x16xf32> to vector<2x16xf32>
    %23 = arith.addf %22, %21 : vector<2x16xf32>
    %24 = math.tanh %23 : vector<2x16xf32>
    %25 = arith.truncf %24 : vector<2x16xf32> to vector<2x16xbf16>
    %cst_8 = arith.constant dense<0.000000e+00> : vector<2x16xf32>
    %26 = tpu.matmul %25, %6, %cst_8 {dimension_numbers = #tpu.dot_dimension_numbers<[1], [0], [0], [1], [0, 0, 1, 1], [], []>} : vector<2x16xbf16>, vector<16x16xbf16>, vector<2x16xf32> -> vector<2x16xf32>
    %27 = vector.extract_strided_slice %12 {offsets = [6, 0], sizes = [2, 16], strides = [1, 1]} : vector<16x16xf32> to vector<2x16xf32>
    %28 = arith.addf %27, %26 : vector<2x16xf32>
    %29 = math.tanh %28 : vector<2x16xf32>
    %30 = arith.truncf %29 : vector<2x16xf32> to vector<2x16xbf16>
    %cst_9 = arith.constant dense<0.000000e+00> : vector<2x16xf32>
    %31 = tpu.matmul %30, %6, %cst_9 {dimension_numbers = #tpu.dot_dimension_numbers<[1], [0], [0], [1], [0, 0, 1, 1], [], []>} : vector<2x16xbf16>, vector<16x16xbf16>, vector<2x16xf32> -> vector<2x16xf32>
    %32 = vector.extract_strided_slice %12 {offsets = [8, 0], sizes = [2, 16], strides = [1, 1]} : vector<16x16xf32> to vector<2x16xf32>
    %33 = arith.addf %32, %31 : vector<2x16xf32>
    %34 = math.tanh %33 : vector<2x16xf32>
    %35 = arith.truncf %34 : vector<2x16xf32> to vector<2x16xbf16>
    %cst_10 = arith.constant dense<0.000000e+00> : vector<2x16xf32>
    %36 = tpu.matmul %35, %6, %cst_10 {dimension_numbers = #tpu.dot_dimension_numbers<[1], [0], [0], [1], [0, 0, 1, 1], [], []>} : vector<2x16xbf16>, vector<16x16xbf16>, vector<2x16xf32> -> vector<2x16xf32>
    %37 = vector.extract_strided_slice %12 {offsets = [10, 0], sizes = [2, 16], strides = [1, 1]} : vector<16x16xf32> to vector<2x16xf32>
    %38 = arith.addf %37, %36 : vector<2x16xf32>
    %39 = math.tanh %38 : vector<2x16xf32>
    %40 = arith.truncf %39 : vector<2x16xf32> to vector<2x16xbf16>
    %cst_11 = arith.constant dense<0.000000e+00> : vector<2x16xf32>
    %41 = tpu.matmul %40, %6, %cst_11 {dimension_numbers = #tpu.dot_dimension_numbers<[1], [0], [0], [1], [0, 0, 1, 1], [], []>} : vector<2x16xbf16>, vector<16x16xbf16>, vector<2x16xf32> -> vector<2x16xf32>
    %42 = vector.extract_strided_slice %12 {offsets = [12, 0], sizes = [2, 16], strides = [1, 1]} : vector<16x16xf32> to vector<2x16xf32>
    %43 = arith.addf %42, %41 : vector<2x16xf32>
    %44 = math.tanh %43 : vector<2x16xf32>
    %45 = arith.truncf %44 : vector<2x16xf32> to vector<2x16xbf16>
    %cst_12 = arith.constant dense<0.000000e+00> : vector<2x16xf32>
    %46 = tpu.matmul %45, %6, %cst_12 {dimension_numbers = #tpu.dot_dimension_numbers<[1], [0], [0], [1], [0, 0, 1, 1], [], []>} : vector<2x16xbf16>, vector<16x16xbf16>, vector<2x16xf32> -> vector<2x16xf32>
    %47 = vector.extract_strided_slice %12 {offsets = [14, 0], sizes = [2, 16], strides = [1, 1]} : vector<16x16xf32> to vector<2x16xf32>
    %48 = arith.addf %47, %46 : vector<2x16xf32>
    %49 = math.tanh %48 : vector<2x16xf32>
    %50 = vector.broadcast %2 : vector<1x16xf32> to vector<2x16xf32>
    %51 = arith.mulf %49, %50 : vector<2x16xf32>
    %cst_13 = arith.constant dense<0.000000e+00> : vector<2xf32>
    %52 = vector.multi_reduction <add>, %51, %cst_13 [1] : vector<2x16xf32> to vector<2xf32>
    %53 = vector.shape_cast %52 : vector<2xf32> to vector<2x1xf32>
    %54 = vector.broadcast %4 : vector<1x1xf32> to vector<2x1xf32>
    %55 = arith.addf %53, %54 : vector<2x1xf32>
    %56 = arith.negf %55 : vector<2x1xf32>
    %57 = math.exp %56 : vector<2x1xf32>
    %cst_14 = arith.constant 1.000000e+00 : f32
    %58 = vector.broadcast %cst_14 : f32 to vector<2x1xf32>
    %59 = arith.addf %58, %57 : vector<2x1xf32>
    %60 = arith.divf %58, %59 : vector<2x1xf32>
    %c0_15 = arith.constant 0 : index
    %c0_16 = arith.constant 0 : index
    %61 = vector.load %arg2[%c0_15, %c0_16] : memref<2x1xf32, #tpu.memory_space<vmem>>, vector<2x1xf32>
    tpu.vector_store %arg2[%c0_15, %c0_16], %60 {strides = array<i32>} : memref<2x1xf32, #tpu.memory_space<vmem>>, vector<2x1xf32>,
    return
  }
}

</mosaic_0001>

<bundles_post_ra>
// kernel: tpu_custom_call.1
= control target key start
LH: loop header
LB: loop body
LE: loop exit
PB: predicated region body
PF: predicated region fallthrough
CT: control target
= control target key end

     0   :  { %v513_v0 = vmov 0   ;;  %v514_v6 = vmov 0.0   ;;  %vm515_vm0 = vmmov 0   ;;  %vm45_vm1 = vcmask 130048   ;;  %s601_s0 = inlined_call_operand.vmem [shape: f32[16,1], index: 0, kind: input, shape index: {}]   ;;  %s602_s1 = inlined_call_operand.vmem [shape: f32[20,16], index: 1, kind: input, shape index: {}]   ;;  %s603_s2 = inlined_call_operand.vmem [shape: f32[2,1], index: 2, kind: output, shape index: {}]  }
   0x1   :  { %492 = vset.pattern.permute.xlu0 %v513_v0  ;;  %v19_v1 = vld [vmem:[%s601_s0] sm:$0xff]  ;;  %v17_v3 = vld [vmem:[%s602_s1 + $0x8] sm:$0xff]  ;;  %447 = vmatprep.subr.bf16.mxu0 %v514_v6  ;;  %v421_v7 = vld [vmem:[%s602_s1 + $0x10] ss:$0 sm:$0xff]  ;;  %vm400_vm2 = vcmask 130054   ;;  %vm415_vm3 = vcmask 7174  }
   0x2   :  { %23 = vperm.xlu0 %492, %v19_v1   ;;  %v16_v2 = vld [vmem:[%s602_s1] sm:$0xff]  ;;  %v20_v4 = vld [vmem:[%s601_s0 + $0x8] sm:$0xff]  ;;  %449 = vmatprep.mubr.msk.bf16.mxu0 %vm515_vm0, %v514_v6  ;;  %v422_v8 = vld [vmem:[%s602_s1 + $0x11] ss:$0 sm:$0xff] }
   0x3   :  { %v543_v5 = vpack.c.bf16 %v17_v3, %v16_v2  ;;  %453 = vmatprep.subr.bf16.mxu1 %v514_v6  ;;  %455 = vmatprep.mubr.msk.bf16.mxu1 %vm515_vm0, %v514_v6 }
   0x5   :  { %448 = vmatpush3.bf16.msra.mxu0 %v543_v5  ;;  %454 = vmatpush3.bf16.msra.mxu1 %v543_v5 }
   0x6   :  { %28 = vperm.xlu0 %492, %v20_v4   ;;  %459 = vmatprep.subr.bf16.mxu0 %v514_v6 }
   0x7   :  { %465 = vmatprep.subr.bf16.mxu1 %v514_v6 }
  0x7d   :  { %v24_v9 = vpop.permute.xlu0 %23 }
  0x7e   :  { %v35_v10 = vmul.f32 %v421_v7, %v24_v9 }
  0x80   :  { %v41_v11 = vadd.f32 %v422_v8, %v35_v10 }
  0x81   :  { %v29_v12 = vpop.permute.xlu0 %28 }
  0x82   :  { %493 = vtanh.f32 %v41_v11  ;;  %v36_v13 = vmul.f32 %v421_v7, %v29_v12 }
  0x84   :  { %v561_v14 = vadd.f32 %v422_v8, %v36_v13 }
  0x8f   :  { %v494_v15 = vpop.eup %493 }
  0x90   :  { %v44_v16 = vpack.c.bf16 %v494_v15, %v494_v15 }
  0x92   :  { %450 = vmatmul.mubr.msk.bf16.vlgmr.msra.gmra.mxu0 %vm45_vm1, %v44_v16  ;;  %v431_v16 = vld [vmem:[%s602_s1 + $0x13] ss:$0 sm:$0xff] }
  0x93   :  { %460 = vmatpush3.bf16.msra.mxu0 %v543_v5  ;;  %461 = vmatprep.mubr.msk.bf16.mxu0 %vm515_vm0, %v514_v6 }
  0x94   :  { %471 = vmatprep.subr.bf16.mxu0 %v514_v6 }
 0x152   :  { %v83_v17 = vpop.f32.mrf.mxu0 }
 0x153   :  { %v90_v18 = vrot.slane %v83_v17, 6 }
 0x154   :  { %v451_v19 = vpop.f32.mrf.mxu0 }
 0x155   :  { %v92_v20 = vadd.f32 %v90_v18, %v41_v11 }
 0x156   :  { %v86_v21 = vpop.f32.mrf.mxu0 }
 0x157   :  { %495 = vtanh.f32 %v92_v20 }
 0x158   :  { %v452_v22 = vpop.f32.mrf.mxu0 }
 0x164   :  { %v496_v23 = vpop.eup %495 }
 0x165   :  { %v94_v24 = vpack.c.bf16 %v496_v23, %v496_v23 }
 0x167   :  { %v96_v25 = vrot.slane %v94_v24, 1 }
 0x169   :  { %456 = vmatmul.mubr.msk.bf16.vlgmr.msra.gmra.mxu1 %vm45_vm1, %v96_v25 }
 0x16a   :  { %466 = vmatpush3.bf16.msra.mxu1 %v543_v5  ;;  %467 = vmatprep.mubr.msk.bf16.mxu1 %vm515_vm0, %v514_v6 }
 0x16b   :  { %477 = vmatprep.subr.bf16.mxu1 %v514_v6 }
 0x229   :  { %v134_v26 = vpop.f32.mrf.mxu1 }
 0x22a   :  { %v141_v27 = vrot.slane %v134_v26, 4 }
 0x22b   :  { %v457_v28 = vpop.f32.mrf.mxu1 }
 0x22c   :  { %v143_v29 = vadd.f32 %v141_v27, %v41_v11 }
 0x22d   :  { %v137_v30 = vpop.f32.mrf.mxu1 }
 0x22e   :  { %497 = vtanh.f32 %v143_v29 }
 0x22f   :  { %v458_v31 = vpop.f32.mrf.mxu1 }
 0x23b   :  { %v498_v32 = vpop.eup %497 }
 0x23c   :  { %v145_v33 = vpack.c.bf16 %v498_v32, %v498_v32 }
 0x23e   :  { %v147_v34 = vrot.slane %v145_v33, 2 }
 0x240   :  { %462 = vmatmul.mubr.msk.bf16.vlgmr.msra.gmra.mxu0 %vm45_vm1, %v147_v34 }
 0x241   :  { %472 = vmatpush3.bf16.msra.mxu0 %v543_v5  ;;  %473 = vmatprep.mubr.msk.bf16.mxu0 %vm515_vm0, %v514_v6 }
 0x242   :  { %483 = vmatprep.subr.bf16.mxu0 %v514_v6 }
 0x300   :  { %v185_v35 = vpop.f32.mrf.mxu0 }
 0x301   :  { %v192_v36 = vrot.slane %v185_v35, 2 }
 0x302   :  { %v463_v37 = vpop.f32.mrf.mxu0 }
 0x303   :  { %v194_v38 = vadd.f32 %v192_v36, %v41_v11  ;;  %v430_v11 = vld [vmem:[%s602_s1 + $0x12] ss:$0 sm:$0xff] }
 0x304   :  { %v188_v39 = vpop.f32.mrf.mxu0 }
 0x305   :  { %499 = vtanh.f32 %v194_v38 }
 0x306   :  { %v464_v40 = vpop.f32.mrf.mxu0 }
 0x312   :  { %v500_v41 = vpop.eup %499 }
 0x313   :  { %v196_v42 = vpack.c.bf16 %v500_v41, %v500_v41 }
 0x315   :  { %v198_v43 = vrot.slane %v196_v42, 3 }
 0x317   :  { %468 = vmatmul.mubr.msk.bf16.vlgmr.msra.gmra.mxu1 %vm45_vm1, %v198_v43 }
 0x318   :  { %478 = vmatpush3.bf16.msra.mxu1 %v543_v5  ;;  %479 = vmatprep.mubr.msk.bf16.mxu1 %vm515_vm0, %v514_v6 }
 0x3d7   :  { %v236_v44 = vpop.f32.mrf.mxu1 }
 0x3d8   :  { %v242_v45 = vadd.f32 %v236_v44, %v561_v14 }
 0x3d9   :  { %v469_v46 = vpop.f32.mrf.mxu1 }
 0x3da   :  { %501 = vtanh.f32 %v242_v45 }
 0x3db   :  { %v239_v47 = vpop.f32.mrf.mxu1 }
 0x3dd   :  { %v470_v48 = vpop.f32.mrf.mxu1 }
 0x3e7   :  { %v502_v49 = vpop.eup %501 }
 0x3e8   :  { %v244_v50 = vpack.c.bf16 %v502_v49, %v502_v49 }
 0x3ea   :  { %474 = vmatmul.mubr.msk.bf16.vlgmr.msra.gmra.mxu0 %vm45_vm1, %v244_v50 }
 0x3eb   :  { %484 = vmatpush3.bf16.msra.mxu0 %v543_v5  ;;  %485 = vmatprep.mubr.msk.bf16.mxu0 %vm515_vm0, %v514_v6 }
 0x4aa   :  { %v282_v51 = vpop.f32.mrf.mxu0 }
 0x4ab   :  { %v289_v52 = vrot.slane %v282_v51, 6 }
 0x4ac   :  { %v475_v53 = vpop.f32.mrf.mxu0 }
 0x4ad   :  { %v291_v54 = vadd.f32 %v289_v52, %v561_v14 }
 0x4ae   :  { %v285_v55 = vpop.f32.mrf.mxu0 }
 0x4af   :  { %503 = vtanh.f32 %v291_v54 }
 0x4b0   :  { %v476_v56 = vpop.f32.mrf.mxu0 }
 0x4bc   :  { %v504_v57 = vpop.eup %503 }
 0x4bd   :  { %v293_v58 = vpack.c.bf16 %v504_v57, %v504_v57 }
 0x4bf   :  { %v295_v59 = vrot.slane %v293_v58, 1 }
 0x4c1   :  { %480 = vmatmul.mubr.msk.bf16.vlgmr.msra.gmra.mxu1 %vm45_vm1, %v295_v59 }
 0x581   :  { %v333_v60 = vpop.f32.mrf.mxu1 }
 0x582   :  { %v340_v61 = vrot.slane %v333_v60, 4 }
 0x583   :  { %v481_v62 = vpop.f32.mrf.mxu1 }
 0x584   :  { %v342_v63 = vadd.f32 %v340_v61, %v561_v14 }
 0x585   :  { %v336_v0 = vpop.f32.mrf.mxu1 }
 0x586   :  { %505 = vtanh.f32 %v342_v63 }
 0x587   :  { %v482_v1 = vpop.f32.mrf.mxu1 }
 0x593   :  { %v506_v2 = vpop.eup %505 }
 0x594   :  { %v344_v3 = vpack.c.bf16 %v506_v2, %v506_v2 }
 0x596   :  { %v346_v4 = vrot.slane %v344_v3, 2 }
 0x598   :  { %486 = vmatmul.mubr.msk.bf16.vlgmr.msra.gmra.mxu0 %vm45_vm1, %v346_v4 }
 0x658   :  { %v384_v5 = vpop.f32.mrf.mxu0 }
 0x659   :  { %v391_v6 = vrot.slane %v384_v5, 2 }
 0x65a   :  { %v487_v7 = vpop.f32.mrf.mxu0 }
 0x65b   :  { %v393_v8 = vadd.f32 %v391_v6, %v561_v14 }
 0x65c   :  { %v387_v9 = vpop.f32.mrf.mxu0 }
 0x65d   :  { %507 = vtanh.f32 %v393_v8 }
 0x65e   :  { %v488_v10 = vpop.f32.mrf.mxu0 }
 0x66a   :  { %v508_v12 = vpop.eup %507 }
 0x66b   :  { %v399_v13 = vmul.f32 %v508_v12, %v430_v11 }
 0x66d   :  { %v401_v15 = vsel %vm400_vm2, %v399_v13, 0.0 }
 0x66e   :  { %402 = vadd.xlane.f32.xlu1 %v401_v15 }
 0x6f7   :  { %v403_v17 = vpop.xlane.xlu1 %402 }
 0x6f8   :  { %v408_v18 = vadd.f32 %v431_v16, %v403_v17 }
 0x6fa   :  { %v432_v19 = vmul.f32 -1.442695, %v408_v18 }
 0x6fc   :  { %509 = vpow2.f32 %v432_v19 }
 0x709   :  { %v510_v14 = vpop.eup %509 }
 0x70a   :  { %v412_v20 = vadd.f32 1.0, %v510_v14 }
 0x70c   :  { %511 = vrcp.f32 %v412_v20 }
 0x719   :  { %v512_v21 = vpop.eup %511 }
 0x71a   :  { %416 = vst.msk [vmem:[%s603_s2 - $0x6] sm:$0xc0] %vm415_vm3, %v512_v21 }

</bundles_post_ra>
